<compile_context>
chip_gen: v6e
topology: v6e:2x2x1
jax: 0.10.0
libtpu: 0.0.40
codegen_flags: <defaults>
</compile_context>

<pallas_src>
import functools
import jax
import jax.numpy as jnp
from jax.experimental import pallas as pl
from jax.experimental.pallas import tpu as pltpu

_MiB = 1024 * 1024


def _round_up(x, m):
    return (x + m - 1) // m * m


def _pad2d(a, shape, dtype):
    """Zero-pad a 2-D array up to `shape` and cast to `dtype` (cheap no-ops)."""
    dtype = jnp.dtype(dtype)
    if a.shape == tuple(shape):
        return a if a.dtype == dtype else a.astype(dtype)
    out = jnp.zeros(shape, dtype)
    return out.at[: a.shape[0], : a.shape[1]].set(a.astype(dtype))


@functools.lru_cache(maxsize=None)
def _vmem_capacity_bytes():
    """Physical VMEM per TensorCore (generation-aware), with a safe fallback."""
    try:
        cap = getattr(pltpu.get_tpu_info(), "vmem_capacity_bytes", None)
        if cap:
            return int(cap)
    except Exception:
        pass
    return 64 * _MiB  # conservative (v7x per-TC)


@functools.lru_cache(maxsize=None)
def _buffered_weights_supported():
    """Probe (once per process) whether pl.Buffered(1) resident operands lower."""
    if not hasattr(pl, "Buffered"):
        return False
    try:
        def k(a_ref, w_ref, o_ref):
            o_ref[...] = a_ref[...] + w_ref[...]

        fn = pl.pallas_call(
            k,
            out_shape=jax.ShapeDtypeStruct((8, 128), jnp.float32),
            grid_spec=pltpu.PrefetchScalarGridSpec(
                num_scalar_prefetch=0,
                grid=(1,),
                in_specs=[
                    pl.BlockSpec((8, 128), lambda i: (0, 0)),
                    pl.BlockSpec((8, 128), lambda i: (0, 0),
                                 pipeline_mode=pl.Buffered(1)),
                ],
                out_specs=pl.BlockSpec((8, 128), lambda i: (0, 0)),
            ),
        )
        jax.jit(fn).lower(jax.ShapeDtypeStruct((8, 128), jnp.float32),
                          jax.ShapeDtypeStruct((8, 128), jnp.float32))
        return True
    except Exception:
        return False


def adapter_kernel(x_ref, wd_ref, bd_ref, wu_ref, bu_ref, o_ref):
    x = x_ref[...]                                  # (TB, Dp) in io dtype
    # down projection: MXU in the weights' (compute) dtype, f32 accumulate
    h = jnp.dot(x.astype(wd_ref.dtype), wd_ref[...],
                preferred_element_type=jnp.float32)
    h = jnp.maximum(h + bd_ref[...], 0.0)           # bias + ReLU in f32 (VPU)
    # up projection: MXU, f32 accumulate
    y = jnp.dot(h.astype(wu_ref.dtype), wu_ref[...],
                preferred_element_type=jnp.float32)
    y = y + bu_ref[...]
    # residual add in f32, single cast on the way out
    o_ref[...] = (x.astype(jnp.float32) + y).astype(o_ref.dtype)


def _pick_batch_tile(B, batch_tile, fits):
    """Choose a batch tile; prefer one that divides B (no batch padding)."""
    if B <= batch_tile and fits(B):
        return B, B                                 # single full-batch tile
    tb = min(_round_up(batch_tile, 8), _round_up(B, 8))
    while tb > 8 and not fits(tb):
        tb = max(8, tb // 2)
    if B % tb != 0:
        # look for a multiple-of-8 divisor of B not much smaller than tb
        t = (tb // 8) * 8
        while t >= 8:
            if B % t == 0 and t * 4 >= tb:
                return t, B
            t -= 8
    return tb, _round_up(B, tb)


def adapter_forward(x, w_down, b_down, w_up, b_up, *,
                    compute_dtype=jnp.bfloat16, io_dtype=None, out_dtype=None,
                    batch_tile=512):
    """Fused adapter forward.

    x       : (..., dim)
    w_down  : (dim, hidden)   (transpose of PyTorch down_proj.weight)
    b_down  : (hidden,)
    w_up    : (hidden, dim)   (transpose of PyTorch up_proj.weight)
    b_up    : (dim,)

    compute_dtype : dtype fed to the MXU (bf16 recommended); accumulation,
                    bias, ReLU and residual stay f32 inside the kernel.
    io_dtype      : dtype x/out are streamed in (defaults to compute_dtype so
                    a bandwidth-bound kernel moves half the bytes; pass
                    jnp.float32 to keep full-precision I/O).
    out_dtype     : output dtype (defaults to io_dtype).
    batch_tile    : target rows per grid step; shrunk to fit the per-generation
                    VMEM budget (v5e/v6e comfortably fit 512+).
    """
    io_dtype = jnp.dtype(compute_dtype if io_dtype is None else io_dtype)
    out_dtype = jnp.dtype(io_dtype if out_dtype is None else out_dtype)

    orig_shape = x.shape
    D = orig_shape[-1]
    x2 = x.reshape(-1, D)
    B = x2.shape[0]
    H = w_down.shape[1]

    # --- pad feature dims to the 128-lane / MXU width (exact: zero rows/cols
    # of the weights and zero biases contribute 0 through ReLU + up-proj). ---
    Dp, Hp = _round_up(D, 128), _round_up(H, 128)
    # TODO(synk): if this kernel ever becomes MXU-bound (bf16 I/O, small D),
    # pad H to 256 on v6e/v7x to fill the 2x256x256 MXU.
    wd = _pad2d(w_down, (Dp, Hp), compute_dtype)
    wu = _pad2d(w_up, (Hp, Dp), compute_dtype)
    bd = _pad2d(b_down.reshape(1, H), (1, Hp), jnp.float32)
    bu = _pad2d(b_up.reshape(1, D), (1, Dp), jnp.float32)

    # --- generation-aware VMEM budget & tile choice ---------------------------
    cap = _vmem_capacity_bytes()
    budget = max(32 * _MiB, cap - 28 * _MiB)   # ~36 MiB on v7x, ~100 MiB on v5e/v6e

    wbuf = 1 if _buffered_weights_supported() else 2   # weight buffer count
    cb = jnp.dtype(compute_dtype).itemsize
    io_b, out_b = io_dtype.itemsize, out_dtype.itemsize

    def vmem_bytes(tb):
        weights = wbuf * (2 * Dp * Hp * cb + (Hp + Dp) * 4)
        io = 2 * tb * Dp * io_b + 2 * tb * Dp * out_b   # double-buffered in/out
        scratch = tb * Hp * 4 + 2 * tb * Dp * 4          # f32 intermediates
        return weights + io + scratch

    TB, Bp = _pick_batch_tile(B, batch_tile, lambda tb: vmem_bytes(tb) <= budget)
    grid = (Bp // TB,)

    # --- only copy x when we actually have to (dtype or padding) -------------
    xp = _pad2d(x2, (Bp, Dp), io_dtype)

    cost = pl.CostEstimate(
        flops=4 * Bp * Dp * Hp,
        transcendentals=0,
        bytes_accessed=int(Bp * Dp * (io_b + out_b)
                           + 2 * Dp * Hp * cb + (Hp + Dp) * 4),
    )
    vmem_limit = int(min(cap - 4 * _MiB,
                         max(16 * _MiB, int(vmem_bytes(TB) * 1.25))))

    def w_spec(shape):
        if wbuf == 1:
            # resident operand: constant index_map, single buffer
            return pl.BlockSpec(shape, lambda i: (0, 0),
                                pipeline_mode=pl.Buffered(1))
        return pl.BlockSpec(shape, lambda i: (0, 0))

    out = pl.pallas_call(
        adapter_kernel,
        out_shape=jax.ShapeDtypeStruct((Bp, Dp), out_dtype),
        grid_spec=pltpu.PrefetchScalarGridSpec(
            num_scalar_prefetch=0,
            grid=grid,
            in_specs=[
                pl.BlockSpec((TB, Dp), lambda i: (i, 0)),   # x tile
                w_spec((Dp, Hp)),                           # w_down (resident)
                w_spec((1, Hp)),                            # b_down (resident)
                w_spec((Hp, Dp)),                           # w_up   (resident)
                w_spec((1, Dp)),                            # b_up   (resident)
            ],
            out_specs=pl.BlockSpec((TB, Dp), lambda i: (i, 0)),
        ),
        compiler_params=pltpu.CompilerParams(
            dimension_semantics=("parallel",),
            vmem_limit_bytes=vmem_limit,
        ),
        cost_estimate=cost,
    )(xp, wd, bd, wu, bu)

    return out[:B, :D].reshape(orig_shape)


def init_adapter_params(key, dim, reduction=4):
    """Mirrors the PyTorch module's explicit inits."""
    hidden = dim // reduction
    k1, k2, k3, k4 = jax.random.split(key, 4)
    # kaiming_normal_(nonlinearity='relu') on weight (hidden, dim): fan_in=dim,
    # std=sqrt(2/dim). Stored transposed as (dim, hidden) so h = x @ w_down.
    w_down = jax.random.normal(k1, (dim, hidden), jnp.float32) * jnp.sqrt(2.0 / dim)
    b_down = jax.random.normal(k2, (hidden,), jnp.float32)          # normal(0,1)
    w_up = jax.random.normal(k3, (hidden, dim), jnp.float32)        # normal(0,1)
    b_up = jax.random.normal(k4, (dim,), jnp.float32)               # normal(0,1)
    return w_down, b_down, w_up, b_up


def adapter_ref(x, w_down, b_down, w_up, b_up):
    h = jnp.maximum(x @ w_down + b_down, 0.0)
    return x + (h @ w_up + b_up)


def _rel_err(out, ref):
    out = jnp.asarray(out, jnp.float32)
    ref = jnp.asarray(ref, jnp.float32)
    return float(jnp.max(jnp.abs(out - ref)) / (jnp.max(jnp.abs(ref)) + 1e-12))


if __name__ == "__main__":
    key = jax.random.PRNGKey(0)
    kx, kp = jax.random.split(key)

    # Small but tiling-exercising shapes: batch 64 with tile 16 -> 4 grid
    # steps (no batch padding), hidden=64 padded to 128 inside the wrapper.
    batch, dim, reduction = 64, 256, 4
    x = jax.random.normal(kx, (batch, dim), jnp.float32)
    w_down, b_down, w_up, b_up = init_adapter_params(kp, dim, reduction)
    ref = adapter_ref(x, w_down, b_down, w_up, b_up)

    # 1) f32 streaming + f32 MXU: tight check of fused math / tiling / padding.
    out_f32 = jax.block_until_ready(
        adapter_forward(x, w_down, b_down, w_up, b_up,
                        compute_dtype=jnp.float32, batch_tile=16))
    assert out_f32.shape == (batch, dim) and out_f32.dtype == jnp.float32
    assert _rel_err(out_f32, ref) < 5e-3, "f32 mismatch vs reference"

    # 2) default path: bf16-streamed I/O, bf16 MXU, f32 accumulate/residual.
    out_bf16 = jax.block_until_ready(
        adapter_forward(x, w_down, b_down, w_up, b_up, batch_tile=16))
    assert out_bf16.shape == (batch, dim) and out_bf16.dtype == jnp.bfloat16
    assert _rel_err(out_bf16, ref) < 2e-2, "bf16 mismatch vs reference"

    # 3) ragged batch (50) + non-128 dim (192): exercises divisor / pad logic.
    batch2, dim2 = 50, 192
    x2 = jax.random.normal(jax.random.PRNGKey(1), (batch2, dim2), jnp.float32)
    params2 = init_adapter_params(jax.random.PRNGKey(2), dim2, reduction)
    ref2 = adapter_ref(x2, *params2)
    out2 = jax.block_until_ready(
        adapter_forward(x2, *params2, compute_dtype=jnp.float32, batch_tile=16))
    assert out2.shape == (batch2, dim2)
    assert _rel_err(out2, ref2) < 5e-3, "ragged-shape mismatch vs reference"

    print("KERNEL_OK")
</pallas_src>

<mosaic_0001>
module attributes {stable_mosaic.version = 11 : i64} {
  func.func @adapter_kernel(%arg0: i32, %arg1: memref<16x256xf32, #tpu.memory_space<vmem>>, %arg2: memref<256x128xf32, #tpu.memory_space<vmem>>, %arg3: memref<1x128xf32, #tpu.memory_space<vmem>>, %arg4: memref<128x256xf32, #tpu.memory_space<vmem>>, %arg5: memref<1x256xf32, #tpu.memory_space<vmem>>, %arg6: memref<16x256xf32, #tpu.memory_space<vmem>>) attributes {dimension_semantics = [#tpu.dimension_semantics<parallel>], iteration_bounds = array<i64: 4>, scalar_prefetch = 0 : i64, scratch_operands = 0 : i64, tpu.core_type = #tpu.core_type<tc>, window_params = [{transform_indices = @transform_0, window_bounds = array<i64: 16, 256>}, {pipeline_mode = #tpu.pipeline_mode<synchronous>, transform_indices = @transform_1, window_bounds = array<i64: 256, 128>}, {pipeline_mode = #tpu.pipeline_mode<synchronous>, transform_indices = @transform_2, window_bounds = array<i64: 1, 128>}, {pipeline_mode = #tpu.pipeline_mode<synchronous>, transform_indices = @transform_3, window_bounds = array<i64: 128, 256>}, {pipeline_mode = #tpu.pipeline_mode<synchronous>, transform_indices = @transform_4, window_bounds = array<i64: 1, 256>}, {transform_indices = @transform_5, window_bounds = array<i64: 16, 256>}]} {
    %c0 = arith.constant 0 : index
    %c0_0 = arith.constant 0 : index
    %0 = vector.load %arg1[%c0, %c0_0] : memref<16x256xf32, #tpu.memory_space<vmem>>, vector<16x256xf32>
    %c0_1 = arith.constant 0 : index
    %c0_2 = arith.constant 0 : index
    %1 = vector.load %arg2[%c0_1, %c0_2] : memref<256x128xf32, #tpu.memory_space<vmem>>, vector<256x128xf32>
    %cst = arith.constant dense<0.000000e+00> : vector<16x128xf32>
    %2 = tpu.matmul %0, %1, %cst {dimension_numbers = #tpu.dot_dimension_numbers<[1], [0], [0], [1], [0, 0, 1, 1], [], []>} : vector<16x256xf32>, vector<256x128xf32>, vector<16x128xf32> -> vector<16x128xf32>
    %c0_3 = arith.constant 0 : index
    %c0_4 = arith.constant 0 : index
    %3 = vector.load %arg3[%c0_3, %c0_4] : memref<1x128xf32, #tpu.memory_space<vmem>>, vector<1x128xf32>
    %4 = vector.broadcast %3 : vector<1x128xf32> to vector<16x128xf32>
    %5 = arith.addf %2, %4 : vector<16x128xf32>
    %cst_5 = arith.constant 0.000000e+00 : f32
    %6 = vector.broadcast %cst_5 : f32 to vector<16x128xf32>
    %7 = arith.maximumf %5, %6 : vector<16x128xf32>
    %c0_6 = arith.constant 0 : index
    %c0_7 = arith.constant 0 : index
    %8 = vector.load %arg4[%c0_6, %c0_7] : memref<128x256xf32, #tpu.memory_space<vmem>>, vector<128x256xf32>
    %cst_8 = arith.constant dense<0.000000e+00> : vector<16x256xf32>
    %9 = tpu.matmul %7, %8, %cst_8 {dimension_numbers = #tpu.dot_dimension_numbers<[1], [0], [0], [1], [0, 0, 1, 1], [], []>} : vector<16x128xf32>, vector<128x256xf32>, vector<16x256xf32> -> vector<16x256xf32>
    %c0_9 = arith.constant 0 : index
    %c0_10 = arith.constant 0 : index
    %10 = vector.load %arg5[%c0_9, %c0_10] : memref<1x256xf32, #tpu.memory_space<vmem>>, vector<1x256xf32>
    %11 = vector.broadcast %10 : vector<1x256xf32> to vector<16x256xf32>
    %12 = arith.addf %9, %11 : vector<16x256xf32>
    %13 = arith.addf %0, %12 : vector<16x256xf32>
    %c0_11 = arith.constant 0 : index
    %c0_12 = arith.constant 0 : index
    %14 = vector.load %arg6[%c0_11, %c0_12] : memref<16x256xf32, #tpu.memory_space<vmem>>, vector<16x256xf32>
    tpu.vector_store %arg6[%c0_11, %c0_12], %13 {strides = array<i32>} : memref<16x256xf32, #tpu.memory_space<vmem>>, vector<16x256xf32>,
    return
  }
  func.func @transform_0(%arg0: i32) -> (i32, i32) {
    %c0_i32 = arith.constant 0 : i32
    %c0_i32_0 = arith.constant 0 : i32
    return %arg0, %c0_i32 : i32, i32
  }
  func.func @transform_1(%arg0: i32) -> (i32, i32) {
    %c0_i32 = arith.constant 0 : i32
    %c0_i32_0 = arith.constant 0 : i32
    %c0_i32_1 = arith.constant 0 : i32
    return %c0_i32, %c0_i32_0 : i32, i32
  }
  func.func @transform_2(%arg0: i32) -> (i32, i32) {
    %c0_i32 = arith.constant 0 : i32
    %c0_i32_0 = arith.constant 0 : i32
    %c0_i32_1 = arith.constant 0 : i32
    return %c0_i32, %c0_i32_0 : i32, i32
  }
  func.func @transform_3(%arg0: i32) -> (i32, i32) {
    %c0_i32 = arith.constant 0 : i32
    %c0_i32_0 = arith.constant 0 : i32
    %c0_i32_1 = arith.constant 0 : i32
    return %c0_i32, %c0_i32_0 : i32, i32
  }
  func.func @transform_4(%arg0: i32) -> (i32, i32) {
    %c0_i32 = arith.constant 0 : i32
    %c0_i32_0 = arith.constant 0 : i32
    %c0_i32_1 = arith.constant 0 : i32
    return %c0_i32, %c0_i32_0 : i32, i32
  }
  func.func @transform_5(%arg0: i32) -> (i32, i32) {
    %c0_i32 = arith.constant 0 : i32
    %c0_i32_0 = arith.constant 0 : i32
    return %arg0, %c0_i32 : i32, i32
  }
}

</mosaic_0001>

<bundles_post_ra>
// kernel: tpu_custom_call.1
= control target key start
LH: loop header
LB: loop body
LE: loop exit
PB: predicated region body
PF: predicated region fallthrough
CT: control target
= control target key end

     0   :  { %10 = vsyncpa [#allocation3], 0  ;;  %s1175_s0 = inlined_call_operand.hbm [shape: f32[64,256], index: 0, kind: input, shape index: {}]   ;;  %s1176_s1 = inlined_call_operand.hbm [shape: f32[256,128], index: 1, kind: input, shape index: {}]   ;;  %s1177_s2 = inlined_call_operand.vmem [shape: f32[1,128], index: 2, kind: input, shape index: {}]   ;;  %s1178_s3 = inlined_call_operand.hbm [shape: f32[128,256], index: 3, kind: input, shape index: {}]   ;;  %s1179_s4 = inlined_call_operand.vmem [shape: f32[1,256], index: 4, kind: input, shape index: {}]   ;;  %s1180_s5 = inlined_call_operand.hbm [shape: f32[64,256], index: 5, kind: output, shape index: {}]  }
   0x1   :  { %12 = vsyncpa [#allocation3 + $0x1], 0 }
   0x2   :  { %13 = vsyncpa [#allocation6], 0 }
   0x3   :  { %14 = vsyncpa [#allocation4], 0 }
   0x4   :  { %16 = vsyncpa [#allocation4 + $0x1], 0  ;;  %s959_s18 = smov 0   ;;  %s961_s19 = smov 0  }
   0x5   :  { %s963_s20 = smov 0   ;;  %s965_s21 = smov 0  }
   0x6 LB: > { %s980_s22 = sadd.s32 4294967295, %s916_s21   ;;  %s631_s23 = sadd.s32 4294967294, %s916_s21   ;;  %s916_s21 = sphi %s965_s21, %s1203_s21   ;;  %s912_s20 = sphi %s963_s20, %s1202_s20   ;;  %s908_s19 = sphi %s961_s19, %s1201_s19   ;;  %s904_s18 = sphi %s959_s18, %s1200_s18  }
   0x7   : > { %p42_p0 = scmp.ne.s32.totalorder %s908_s19, %s904_s18  ;;  %p1181_p1 = scmp.eq.s32.totalorder %s980_s22, 0 }
   0x8   : > { %p156_p3 = scmp.eq.s32.totalorder %s631_s23, 3  ;;  %p632_p5 = scmp.ge.s32.totalorder %s916_s21, 1 }
   0x9   : > { %p989_p4 = por %p1181_p1, %p42_p0  ;;  %p163_p7 = scmp.lt.s32.totalorder %s916_s21, 5 }
   0xa   : > { %p994_p6 = por %p156_p3, %p42_p0  ;;  %s918_s27 = smov [#allocation5]  }
   0xb   : > { %s1186_s24 = scalar_select %p989_p4, 1, 0 }
   0xc   : > { %s1187_s25 = scalar_select %p994_p6, 1, 0 }
   0xd   : > { %p999_p8 = pnand %p632_p5, %p163_p7  ;;  %s175_s28 = sshll.u32 %s918_s27, 4  ;;  %s176_s28 = int_to_ptr.vmem [resolvable:$true] %s175_s28 }
   0xe   : > { %s919_s30 = smov [#allocation7]   ;;  %s779_s7 = scalar_lea.vmem %s176_s28, 4096 }
   0xf   : > { %s1188_s26 = scalar_select %p999_p8, 1, 0 }
  0x10   : > { %p706_p9 = pneg %p999_p8  ;;  %s191_s6 = sshll.u32 %s919_s30, 4  ;;  %s192_s6 = int_to_ptr.vmem [resolvable:$true] %s191_s6 }
  0x11   : > { %p780_p12 = scmp.ne.s32.totalorder %s176_s28, %s779_s7  ;;  %p787_p3 = scmp.lt.s32.totalorder %s176_s28, %s176_s28 }
  0x12   : > { %p1007_p10 = pnand %p706_p9, %p1181_p1  ;;  %p788_p5 = scmp.lt.s32.totalorder %s779_s7, %s779_s7 }
  0x14   : > { %p770_p11 = pneg %p1007_p10  ;;  %p789_p7 = por %p788_p5, %p787_p3 }
  0x16   : > { %p782_p13 = pnand %p780_p12, %p770_p11 }
  0x18   : > { %p783_p0 = pneg %p782_p13 }
  0x1a   : > { %p790_p9 = pnand %p789_p7, %p783_p0 }
  0x1c   : > { %793 = shalt.err (!%p790_p9)
}
  0x1d   : > { %s920_s8 = smov 128   ;;  %s921_s9 = smov 8  }
  0x1e   : > { %709 = dma.hbm_to_vmem [thread:$0]  (!%p1007_p10), %s1176_s1, 4096, %s176_s28, [#allocation6], %s920_s8, %s920_s8, %s921_s9  }
  0x1f   : > { %s805_s12 = scalar_lea.vmem %s192_s6, 4096  ;;  %p813_p2 = scmp.lt.s32.totalorder %s192_s6, %s192_s6 }
  0x20   : > { %p806_p1 = scmp.ne.s32.totalorder %s192_s6, %s805_s12  ;;  %p814_p6 = scmp.lt.s32.totalorder %s805_s12, %s805_s12 }
  0x22   : > { %p808_p12 = pnand %p806_p1, %p770_p11  ;;  %p815_p3 = por %p814_p6, %p813_p2 }
  0x24   : > { %p809_p13 = pneg %p808_p12 }
  0x26   : > { %p816_p0 = pnand %p815_p3, %p809_p13 }
  0x28   : > { %819 = shalt.err (!%p816_p0)
}
  0x29   : > { %s1182_s13 = smov 256   ;;  %s923_s14 = smov 16  }
  0x2a   : > { %712 = dma.hbm_to_vmem [thread:$0]  (!%p1007_p10), %s1178_s3, 4096, %s192_s6, [#allocation6], %s1182_s13, %s1182_s13, %s923_s14  }
  0x2b   : > { %s1033_s17 = sadd.s32 1, %s916_s21   ;;  %s29_s27 = sadd.s32 1, %s912_s20 }
  0x2c   : > { %s26_s23 = ssub.s32 %s916_s21, %s1033_s17  ;;  %p36_p2 = scmp.ne.s32.totalorder %s912_s20, %s908_s19 }
  0x2d   : > { %p27_p1 = scmp.eq.s32.totalorder %s26_s23, 0  ;;  %p37_p6 = scmp.eq.s32.totalorder %s916_s21, 0 }
  0x2e   : > { %p1190_p5 = scmp.eq.s32.totalorder %s980_s22, 3  ;;  %p723_p9 = scmp.lt.s32.totalorder %s916_s21, 4 }
  0x2f   : > { %s1042_s28 = scalar_select %p27_p1, %s912_s20, %s29_s27  }
  0x30   : > { %p38_p11 = por %p37_p6, %p36_p2  ;;  %p1046_p7 = por %p1190_p5, %p36_p2 }
  0x31   : > { %s208_s30 = sand.u32 1, %s912_s20   ;;  %s653_s6 = sshll.u32 %s916_s21, 9 }
  0x32   : > { %s1191_s29 = scalar_select %p1046_p7, 1, 0 }
  0x33   : > { %s636_s7 = sshll.u32 %s208_s30, 5  ;;  %s1056_s10 = scalar_lea.hbm %s1175_s0, %s653_s6 }
  0x34   : > { %s212_s11 = scalar_lea.vmem [#allocation2], %s636_s7  ;;  %p1060_p10 = pnand %p723_p9, %p38_p11 }
  0x35   : > { %s220_s12 = sshll.u32 %s212_s11, 4  ;;  %s1064_s16 = scalar_lea.sflag [#allocation3], %s208_s30  ;;  %s1058_s12 = int_to_ptr.vmem [resolvable:$true] %s220_s12 }
  0x36   : > { %s820_s23 = scalar_lea.hbm %s1056_s10, 512  ;;  %p822_p13 = pneg %p1060_p10 }
  0x37   : > { %p821_p12 = scmp.ne.s32.totalorder %s1056_s10, %s820_s23  ;;  %s825_s7 = scalar_lea.hbm %s1175_s0, 2048 }
  0x38   : > { %p826_p1 = scmp.lt.s32.totalorder %s1056_s10, %s1175_s0  ;;  %p827_p2 = scmp.lt.s32.totalorder %s825_s7, %s820_s23 }
  0x39   : > { %p823_p3 = pnand %p822_p13, %p821_p12 }
  0x3a   : > { %p828_p6 = por %p827_p2, %p826_p1 }
  0x3b   : > { %p824_p0 = pneg %p823_p3 }
  0x3d   : > { %p829_p11 = pnand %p828_p6, %p824_p0 }
  0x3f   : > { %832 = shalt.err (!%p829_p11)
}
  0x40   : > { %s833_s30 = scalar_lea.vmem %s1058_s12, 512  ;;  %s924_s11 = smov [#allocation2]  }
  0x41   : > { %p834_p5 = scmp.ne.s32.totalorder %s1058_s12, %s833_s30  ;;  %s838_s13 = sshll.u32 %s924_s11, 4  ;;  %s839_s13 = int_to_ptr.vmem [resolvable:$false] %s838_s13 }
  0x42   : > { %s840_s27 = scalar_lea.vmem %s839_s13, 1024  ;;  %p841_p3 = scmp.lt.s32.totalorder %s1058_s12, %s839_s13 }
  0x43   : > { %p836_p9 = pnand %p834_p5, %p822_p13  ;;  %p842_p7 = scmp.lt.s32.totalorder %s840_s27, %s833_s30 }
  0x45   : > { %p837_p12 = pneg %p836_p9  ;;  %p843_p4 = por %p842_p7, %p841_p3 }
  0x47   : > { %p844_p8 = pnand %p843_p4, %p837_p12 }
  0x49   : > { %847 = shalt.err (!%p844_p8)
}
  0x4a   : > { %s1193_s23 = smov 256   ;;  %p1194_p13 = scmp.ne.s32.totalorder %s1188_s26, 0 }
  0x4b   : > { %716 = dma.hbm_to_vmem [thread:$0]  (!%p1060_p10), %s1056_s10, 512, %s1058_s12, %s1064_s16, %s1193_s23, %s1193_s23, %s923_s14  }
  0x4c   : > { %232 = sbr.rel (%p1194_p13) target bundleno = 536 (0x218), region = 40  ;;  %s1091_s6 = sand.u32 (!%p1194_p13), 1, %s908_s19  }
  0x4d   : > { %s641_s13 = sshll.u32 (!%p1194_p13), %s1091_s6, 5  ;;  %s235_s7 = scalar_lea.sflag (!%p1194_p13), [#allocation3], %s1091_s6 }
  0x4e   : > { %s1097_s15 = scalar_lea.vmem (!%p1194_p13), [#allocation2], %s641_s13  ;;  %p1195_p4 = scmp.ne.s32.totalorder (!%p1194_p13), %s1186_s24, 0 }
  0x51   : > { %891 = dma.done.wait (%p1195_p4), %s235_s7, 512  }
  0x52   : > { %893 = vsyncadd (%p1195_p4), %s235_s7, 4294966784  ;;  %p1196_p8 = scmp.eq.s32.totalorder %s980_s22, 0 }
  0x54   : > { %895 = dma.done.wait (%p1196_p8), [#allocation6], 8192   ;;  %p1197_p7 = pmov %p1196_p8 }
  0x55   : > { %v310_v0 = vld [vmem:[#allocation5 + $0xf8] sm:$0xff]  ;;  %v309_v2 = vld [vmem:[#allocation5 + $0xf0] sm:$0xff]  ;;  %v308_v4 = vld [vmem:[#allocation5 + $0xe8] sm:$0xff]  ;;  %s272_s12 = scalar_lea.vmem [#allocation8], %s641_s13  ;;  %s655_s8 = sshll.u32 %s980_s22, 9 }
  0x56   : > { %897 = vsyncadd (%p1197_p7), [#allocation6], 4294959104  ;;  %v294_v1 = vld [vmem:[#allocation5 + $0x78] sm:$0xff]  ;;  %656 = vmatprep.subr.mxu0 %v310_v0  ;;  %v293_v3 = vld [vmem:[#allocation5 + $0x70] sm:$0xff]  ;;  %s539_s16 = sshll.u32 %s272_s12, 4  ;;  %s1132_s11 = scalar_lea.hbm %s1180_s5, %s655_s8  ;;  %s1127_s16 = int_to_ptr.vmem [resolvable:$true] %s539_s16 }
  0x57   : > { %657 = vmatpush3.msra.mxu0 %v294_v1  ;;  %v292_v5 = vld [vmem:[#allocation5 + $0x68] sm:$0xff]  ;;  %v307_v6 = vld [vmem:[#allocation5 + $0xe0] sm:$0xff]  ;;  %v306_v8 = vld [vmem:[#allocation5 + $0xd8] sm:$0xff]  ;;  %s525_s27 = scalar_lea.sflag [#allocation4], %s1091_s6  ;;  %s848_s22 = scalar_lea.vmem %s1127_s16, 512 }
  0x58   : > { %658 = vmatprep.subr.mxu0 %v309_v2  ;;  %v291_v7 = vld [vmem:[#allocation5 + $0x60] sm:$0xff]  ;;  %v290_v9 = vld [vmem:[#allocation5 + $0x58] sm:$0xff]  ;;  %v305_v10 = vld [vmem:[#allocation5 + $0xd0] sm:$0xff]  ;;  %p849_p10 = scmp.ne.s32.totalorder %s1127_s16, %s848_s22  ;;  %p1198_p0 = scmp.ne.s32.totalorder %s1191_s29, 0 }
  0x59   : > { %659 = vmatpush3.msra.mxu0 %v293_v3  ;;  %v289_v11 = vld [vmem:[#allocation5 + $0x50] sm:$0xff]  ;;  %v304_v12 = vld [vmem:[#allocation5 + $0xc8] sm:$0xff]  ;;  %v303_v15 = vld [vmem:[#allocation5 + $0xc0] sm:$0xff]  ;;  %s926_s23 = smov [#allocation8]  }
  0x5a   : > { %660 = vmatprep.subr.mxu0 %v308_v4  ;;  %v1108_v13 = vld [vmem:[%s1097_s15 + $0x8] sm:$0xff]  ;;  %v426_v16 = vld [vmem:[#allocation7 + $0xf8] sm:$0xff]  ;;  %v425_v17 = vld [vmem:[#allocation7 + $0xf0] sm:$0xff]  ;;  %v925_v4 = vmov 0.0   ;;  %p850_p1 = pnand %p849_p10, %p1198_p0  ;;  %s852_s13 = sshll.u32 %s926_s23, 4  ;;  %s853_s13 = int_to_ptr.vmem [resolvable:$false] %s852_s13 }
  0x5b   : > { %661 = vmatpush3.msra.mxu0 %v292_v5  ;;  %v288_v14 = vld [vmem:[#allocation5 + $0x48] sm:$0xff]  ;;  %382 = vmatprep.mubr.f32.mxu0 %v1108_v13  ;;  %v287_v19 = vld [vmem:[#allocation5 + $0x40] sm:$0xff]  ;;  %v302_v21 = vld [vmem:[#allocation5 + $0xb8] sm:$0xff]  ;;  %s854_s7 = scalar_lea.vmem %s853_s13, 1024  ;;  %p855_p6 = scmp.lt.s32.totalorder %s1127_s16, %s853_s13 }
  0x5c   : > { %662 = vmatprep.subr.mxu0 %v307_v6  ;;  %v424_v18 = vld [vmem:[#allocation7 + $0xe8] sm:$0xff]  ;;  %439 = vmatprep.subr.mxu1 %v426_v16  ;;  %v423_v20 = vld [vmem:[#allocation7 + $0xe0] sm:$0xff]  ;;  %v422_v22 = vld [vmem:[#allocation7 + $0xd8] sm:$0xff]  ;;  %p851_p2 = pneg %p850_p1  ;;  %p856_p11 = scmp.lt.s32.totalorder %s854_s7, %s848_s22 }
  0x5d   : > { %663 = vmatpush3.msra.mxu0 %v291_v7  ;;  %440 = vmatpush1.msra.mxu1 %v425_v17  ;;  %v286_v23 = vld [vmem:[#allocation5 + $0x38] sm:$0xff]  ;;  %v421_v24 = vld [vmem:[#allocation7 + $0xd0] sm:$0xff]  ;;  %v420_v26 = vld [vmem:[#allocation7 + $0xc8] sm:$0xff]  ;;  %v429_v17 = vlaneseq }
  0x5e   : > { %664 = vmatprep.subr.mxu0 %v306_v8  ;;  %441 = vmatprep.subr.mxu1 %v424_v18  ;;  %v301_v25 = vld [vmem:[#allocation5 + $0xb0] sm:$0xff]  ;;  %v419_v28 = vld [vmem:[#allocation7 + $0xc0] sm:$0xff]  ;;  %v300_v29 = vld [vmem:[#allocation5 + $0xa8] sm:$0xff]  ;;  %p857_p5 = por %p856_p11, %p855_p6 }
  0x5f   : > { %665 = vmatpush3.msra.mxu0 %v290_v9  ;;  %442 = vmatpush1.msra.mxu1 %v423_v20  ;;  %v285_v27 = vld [vmem:[#allocation5 + $0x30] sm:$0xff]  ;;  %v418_v30 = vld [vmem:[#allocation7 + $0xb8] sm:$0xff]  ;;  %v284_v31 = vld [vmem:[#allocation5 + $0x28] sm:$0xff]  ;;  %v430_v18 = vshrl.u32 %v429_v17, 7 }
  0x60   : > { %666 = vmatprep.subr.mxu0 %v305_v10  ;;  %443 = vmatprep.subr.mxu1 %v422_v22  ;;  %v417_v32 = vld [vmem:[#allocation7 + $0xb0] sm:$0xff]  ;;  %v299_v33 = vld [vmem:[#allocation5 + $0xa0] sm:$0xff]  ;;  %v416_v34 = vld [vmem:[#allocation7 + $0xa8] sm:$0xff]  ;;  %p858_p9 = pnand %p857_p5, %p851_p2 }
  0x61   : > { %667 = vmatpush3.msra.mxu0 %v289_v11  ;;  %444 = vmatpush1.msra.mxu1 %v421_v24  ;;  %v283_v35 = vld [vmem:[#allocation5 + $0x20] sm:$0xff]  ;;  %v298_v37 = vld [vmem:[#allocation5 + $0x98] sm:$0xff]  ;;  %v413_v40 = vld [vmem:[#allocation7 + $0x90] sm:$0xff] }
  0x62   : > { %668 = vmatprep.subr.mxu0 %v304_v12  ;;  %445 = vmatprep.subr.mxu1 %v420_v26  ;;  %v415_v36 = vld [vmem:[#allocation7 + $0xa0] sm:$0xff]  ;;  %v414_v38 = vld [vmem:[#allocation7 + $0x98] sm:$0xff]  ;;  %v297_v41 = vld [vmem:[#allocation5 + $0x90] sm:$0xff] }
  0x63   : > { %669 = vmatpush3.msra.mxu0 %v288_v14  ;;  %446 = vmatpush1.msra.mxu1 %v419_v28  ;;  %v282_v39 = vld [vmem:[#allocation5 + $0x18] sm:$0xff]  ;;  %v412_v42 = vld [vmem:[#allocation7 + $0x88] sm:$0xff]  ;;  %v281_v43 = vld [vmem:[#allocation5 + $0x10] sm:$0xff] }
  0x64   : > { %670 = vmatprep.subr.mxu0 %v303_v15  ;;  %447 = vmatprep.subr.mxu1 %v418_v30  ;;  %v411_v44 = vld [vmem:[#allocation7 + $0x80] sm:$0xff]  ;;  %v296_v45 = vld [vmem:[#allocation5 + $0x88] sm:$0xff]  ;;  %v410_v46 = vld [vmem:[#allocation7 + $0x78] sm:$0xff] }
  0x65   : > { %671 = vmatpush3.msra.mxu0 %v287_v19  ;;  %448 = vmatpush1.msra.mxu1 %v417_v32  ;;  %v280_v47 = vld [vmem:[#allocation5 + $0x8] sm:$0xff]  ;;  %v409_v48 = vld [vmem:[#allocation7 + $0x70] sm:$0xff]  ;;  %v295_v49 = vld [vmem:[#allocation5 + $0x80] sm:$0xff]  ;;  %v431_v19 = vsub.s32 0, %v430_v18 }
  0x66   : > { %672 = vmatprep.subr.mxu0 %v302_v21  ;;  %449 = vmatprep.subr.mxu1 %v416_v34  ;;  %v408_v50 = vld [vmem:[#allocation7 + $0x68] sm:$0xff]  ;;  %v279_v51 = vld [vmem:[#allocation5] sm:$0xff]  ;;  %v406_v54 = vld [vmem:[#allocation7 + $0x58] sm:$0xff]  ;;  %v435_v21 = vsub.s32 1, %v430_v18 }
  0x67   : > { %673 = vmatpush3.msra.mxu0 %v286_v23  ;;  %450 = vmatpush1.msra.mxu1 %v415_v36  ;;  %v407_v52 = vld [vmem:[#allocation7 + $0x60] sm:$0xff]  ;;  %v1113_v55 = vld [vmem:[%s1097_s15 + $0x18] sm:$0xff]  ;;  %v405_v56 = vld [vmem:[#allocation7 + $0x50] sm:$0xff] }
  0x68   : > { %674 = vmatprep.subr.mxu0 %v301_v25  ;;  %451 = vmatprep.subr.mxu1 %v414_v38  ;;  %v275_v53 = vld [vmem:[%s1097_s15] sm:$0xff]  ;;  %v404_v57 = vld [vmem:[#allocation7 + $0x48] sm:$0xff]  ;;  %v277_v58 = vld [vmem:[%s1097_s15 + $0x10] sm:$0xff] }
  0x69   : > { %675 = vmatpush3.msra.mxu0 %v285_v27  ;;  %452 = vmatpush1.msra.mxu1 %v413_v40  ;;  %v403_v59 = vld [vmem:[#allocation7 + $0x40] sm:$0xff]  ;;  %v402_v60 = vld [vmem:[#allocation7 + $0x38] sm:$0xff]  ;;  %v401_v61 = vld [vmem:[#allocation7 + $0x30] sm:$0xff] }
  0x6a   : > { %676 = vmatprep.subr.mxu0 %v300_v29  ;;  %453 = vmatprep.subr.mxu1 %v412_v42  ;;  %v400_v62 = vld [vmem:[#allocation7 + $0x28] sm:$0xff]  ;;  %v399_v63 = vld [vmem:[#allocation7 + $0x20] sm:$0xff]  ;;  %v398_v0 = vld [vmem:[#allocation7 + $0x18] sm:$0xff] }
  0x6b   : > { %677 = vmatpush3.msra.mxu0 %v284_v31  ;;  %454 = vmatpush1.msra.mxu1 %v411_v44  ;;  %v397_v1 = vld [vmem:[#allocation7 + $0x10] sm:$0xff]  ;;  %v396_v2 = vld [vmem:[#allocation7 + $0x8] sm:$0xff]  ;;  %v395_v3 = vld [vmem:[#allocation7] sm:$0xff] }
  0x6c   : > { %678 = vmatprep.subr.mxu0 %v299_v33  ;;  %455 = vmatprep.subr.mxu1 %v410_v46  ;;  %v645_v6 = vld [vmem:[%s1177_s2] ss:$0 sm:$0xff] }
  0x6d   : > { %679 = vmatpush3.msra.mxu0 %v283_v35  ;;  %456 = vmatpush1.msra.mxu1 %v409_v48  ;;  %v427_v20 = vld [vmem:[%s1179_s4] sm:$0x3] }
  0x6e   : > { %680 = vmatprep.subr.mxu0 %v298_v37  ;;  %457 = vmatprep.subr.mxu1 %v408_v50  ;;  %v432_v22 = vrot.slane %v427_v20, %v431_v19  ;;  %v436_v23 = vrot.slane %v427_v20, %v435_v21 }
  0x6f   : > { %681 = vmatpush3.msra.mxu0 %v282_v39  ;;  %458 = vmatpush1.msra.mxu1 %v407_v52 }
  0x70   : > { %682 = vmatprep.subr.mxu0 %v297_v41  ;;  %459 = vmatprep.subr.mxu1 %v406_v54 }
  0x71   : > { %683 = vmatpush3.msra.mxu0 %v281_v43  ;;  %460 = vmatpush1.msra.mxu1 %v405_v56 }
  0x72   : > { %684 = vmatprep.subr.mxu0 %v296_v45  ;;  %461 = vmatprep.subr.mxu1 %v404_v57 }
  0x73   : > { %685 = vmatpush3.msra.mxu0 %v280_v47  ;;  %462 = vmatpush1.msra.mxu1 %v403_v59 }
  0x74   : > { %686 = vmatprep.subr.mxu0 %v295_v49  ;;  %463 = vmatprep.subr.mxu1 %v402_v60 }
  0x75   : > { %687 = vmatpush3.msra.mxu0 %v279_v51  ;;  %464 = vmatpush1.msra.mxu1 %v401_v61 }
  0x76   : > { %383 = vmatmul.mubr.f32.vlgmr.msra.gmra.mxu0 %v275_v53  ;;  %465 = vmatprep.subr.mxu1 %v400_v62 }
  0x77   : > { %387 = vmatprep.mubr.f32.mxu0 %v1113_v55  ;;  %466 = vmatpush1.msra.mxu1 %v399_v63 }
  0x78   : > { %467 = vmatprep.subr.mxu1 %v398_v0  ;;  %503 = vmatprep.mubr.f32.mxu1 %v925_v4 }
  0x79   : > { %468 = vmatpush1.msra.mxu1 %v397_v1 }
  0x7a   : > { %388 = vmatmul.mubr.f32.gmra.mxu0 %v277_v58  ;;  %469 = vmatprep.subr.mxu1 %v396_v2 }
  0x7b   : > { %470 = vmatpush1.msra.mxu1 %v395_v3 }
 0x136   : > { %v688_v5 = vpop.f32.mrf.mxu0 }
 0x138   : > { %v689_v7 = vpop.f32.mrf.mxu0 }
 0x139   : > { %v690_v8 = vadd.f32 %v689_v7, %v688_v5 }
 0x13a   : > { %v691_v9 = vpop.f32.mrf.mxu0 }
 0x13b   : > { %v385_v10 = vadd.f32 %v690_v8, %v645_v6 }
 0x13c   : > { %v692_v11 = vpop.f32.mrf.mxu0 }
 0x13d   : > { %v393_v12 = vmax.f32 %v385_v10, 0.0  ;;  %v693_v14 = vadd.f32 %v692_v11, %v691_v9 }
 0x13f   : > { %v390_v15 = vadd.f32 %v693_v14, %v645_v6  ;;  %504 = vmatmul.mubr.f32.vlgmr.msra.gmra.mxu1 %v393_v12 }
 0x140   : > { %509 = vmatprep.mubr.f32.mxu1 %v925_v4 }
 0x141   : > { %v394_v16 = vmax.f32 %v390_v15, 0.0 }
 0x143   : > { %510 = vmatmul.mubr.f32.gmra.mxu1 %v394_v16 }
 0x1ff   : > { %v505_v24 = vpop.f32.mrf.mxu1 }
 0x200   : > { %v506_v25 = vadd.f32 %v505_v24, %v432_v22 }
 0x201   : > { %v507_v26 = vpop.f32.mrf.mxu1 }
 0x202   : > { %v516_v27 = vadd.f32 %v506_v25, %v275_v53  ;;  %v508_v28 = vadd.f32 %v507_v26, %v436_v23 }
 0x203   : > { %v511_v29 = vpop.f32.mrf.mxu1 }
 0x204   : > { %520 = vst [vmem:[%s272_s12] sm:$0xff] %v516_v27  ;;  %v517_v30 = vadd.f32 %v508_v28, %v1108_v13  ;;  %v512_v31 = vadd.f32 %v511_v29, %v432_v22 }
 0x205   : > { %v513_v32 = vpop.f32.mrf.mxu1 }
 0x206   : > { %521 = vst [vmem:[%s272_s12 + $0x8] sm:$0xff] %v517_v30  ;;  %v518_v33 = vadd.f32 %v512_v31, %v277_v58  ;;  %v514_v34 = vadd.f32 %v513_v32, %v436_v23 }
 0x208   : > { %522 = vst [vmem:[%s272_s12 + $0x10] sm:$0xff] %v518_v33  ;;  %v519_v35 = vadd.f32 %v514_v34, %v1113_v55 }
 0x20a   : > { %523 = vst [vmem:[%s272_s12 + $0x18] sm:$0xff] %v519_v35 }
 0x20b   : > { %861 = shalt.err (!%p858_p9)
}
 0x20c   : > { %s862_s15 = scalar_lea.hbm %s1132_s11, 512  ;;  %s866_s14 = scalar_lea.hbm %s1180_s5, 2048 }
 0x20d   : > { %p863_p12 = scmp.ne.s32.totalorder %s1132_s11, %s862_s15  ;;  %p867_p4 = scmp.lt.s32.totalorder %s1132_s11, %s1180_s5 }
 0x20e   : > { %p868_p8 = scmp.lt.s32.totalorder %s866_s14, %s862_s15 }
 0x20f   : > { %p864_p3 = pnand %p863_p12, %p1198_p0 }
 0x210   : > { %p869_p7 = por %p868_p8, %p867_p4 }
 0x211   : > { %p865_p13 = pneg %p864_p3 }
 0x213   : > { %p870_p10 = pnand %p869_p7, %p865_p13 }
 0x215   : > { %873 = shalt.err (!%p870_p10)
}
 0x216   : > { %s927_s8 = smov 256   ;;  %s928_s9 = smov 16  }
 0x217   : > { %704 = dma.vmem_to_hbm [thread:$0]  (%p1198_p0), %s1127_s16, 512, %s1132_s11, %s525_s27, %s927_s8, %s927_s8, %s928_s9  }
 0x218 PF: > { %p726_p1 = scmp.ge.s32.totalorder %s916_s21, 2  ;;  %s554_s30 = sand.u32 1, %s904_s18  }
 0x219   : > { %p1199_p2 = scmp.ne.s32.totalorder %s1187_s25, 0  ;;  %s555_s22 = scalar_lea.sflag [#allocation4], %s554_s30 }
 0x21b   : > { %p718_p6 = pnand %p726_p1, %p1199_p2 }
 0x21d   : > { %p719_p11 = pneg %p718_p6 }
 0x21f   : > { %899 = dma.done.wait (%p719_p11), %s555_s22, 512  }
 0x220   : > { %901 = vsyncadd (%p719_p11), %s555_s22, 4294966784  ;;  %p19_p5 = scmp.ge.s32.totalorder %s1033_s17, 6   ;;  %s1200_s18 = smov %s908_s19 }
 0x221   : > { %s1201_s19 = smov %s912_s20  ;;  %s1202_s20 = smov %s1042_s28 }
 0x222   : > { %s1203_s21 = smov %s1033_s17  ;;  %21 = sbr.rel (!%p19_p5) target bundleno = 6 (0x6), region = 93 }
 0x227   :  { %560 = vsyncpa [#allocation3], 1 }
 0x228   :  { %562 = vsyncpa [#allocation3 + $0x1], 1 }
 0x229   :  { %563 = vsyncpa [#allocation6], 1 }
 0x22a   :  { %564 = vsyncpa [#allocation4], 1 }
 0x22b   :  { %566 = vsyncpa [#allocation4 + $0x1], 1 }

</bundles_post_ra>
